<compile_context>
chip_gen: v5e
topology: v5e:2x2
jax: 0.10.0
libtpu: 0.0.40
codegen_flags: <defaults>
</compile_context>

<pallas_src>
import functools

import jax
import jax.numpy as jnp
from jax.experimental import pallas as pl
from jax.experimental.pallas import tpu as pltpu

_LANE = 128


# --------------------------------------------------------------------------
# Kernel for the 128-aligned path: inputs viewed as (B, N/128, 128) so every
# vreg is sublane+lane dense.  Accumulates per-batch, lane-wise partial sums.
# --------------------------------------------------------------------------
def _dice_sums_kernel_3d(x_ref, t_ref, inter_ref, denom_ref, *,
                         r_total, r_blk, need_mask):
    """x_ref/t_ref: (b_blk, r_blk, 128); inter/denom: (b_blk, 1, 128) resident."""
    k = pl.program_id(1)

    @pl.when(k == 0)
    def _():
        inter_ref[...] = jnp.zeros_like(inter_ref)
        denom_ref[...] = jnp.zeros_like(denom_ref)

    x = x_ref[...].astype(jnp.float32)
    t = t_ref[...].astype(jnp.float32)

    def _accum(xv, tv):
        # Reduce only the sublane (row) axis here; lanes are reduced in the
        # tiny JAX epilogue.  Denominator sums are fused into one reduce.
        inter_ref[...] += jnp.sum(xv * tv, axis=1, keepdims=True)
        denom_ref[...] += jnp.sum(xv + tv, axis=1, keepdims=True)

    if need_mask:
        last = pl.num_programs(1) - 1

        @pl.when(k == last)
        def _():
            # Only the final chunk can hang off the end of the row axis.
            row = jax.lax.broadcasted_iota(jnp.int32, x.shape, 1) + k * r_blk
            valid = row < r_total
            _accum(jnp.where(valid, x, 0.0), jnp.where(valid, t, 0.0))

        @pl.when(k < last)
        def _():
            _accum(x, t)
    else:
        _accum(x, t)


# --------------------------------------------------------------------------
# Kernel for the ragged path (N % 128 != 0): inputs stay in their flat (B, N)
# layout (no pad copy); the lane tail of the last chunk is masked in-kernel.
# --------------------------------------------------------------------------
def _dice_sums_kernel_2d(x_ref, t_ref, inter_ref, denom_ref, *,
                         n_total, c_blk, need_mask):
    """x_ref/t_ref: (B, c_blk); inter/denom: (B, 1) resident accumulators."""
    k = pl.program_id(0)

    @pl.when(k == 0)
    def _():
        inter_ref[...] = jnp.zeros_like(inter_ref)
        denom_ref[...] = jnp.zeros_like(denom_ref)

    x = x_ref[...].astype(jnp.float32)
    t = t_ref[...].astype(jnp.float32)

    def _accum(xv, tv):
        inter_ref[...] += jnp.sum(xv * tv, axis=1, keepdims=True)
        denom_ref[...] += jnp.sum(xv + tv, axis=1, keepdims=True)

    if need_mask:
        last = pl.num_programs(0) - 1

        @pl.when(k == last)
        def _():
            col = jax.lax.broadcasted_iota(jnp.int32, x.shape, 1) + k * c_blk
            valid = col < n_total
            _accum(jnp.where(valid, x, 0.0), jnp.where(valid, t, 0.0))

        @pl.when(k < last)
        def _():
            _accum(x, t)
    else:
        _accum(x, t)


# --------------------------------------------------------------------------
# Wrappers.
# --------------------------------------------------------------------------
def _dice_sums_aligned(x, t, rows_per_block):
    """N % 128 == 0: sublane-dense (B, N/128, 128) view (free reshape)."""
    B, N = x.shape
    r_total = N // _LANE
    x3 = x.reshape(B, r_total, _LANE)
    t3 = t.reshape(B, r_total, _LANE)

    # Row-chunk: multiple of 32 sublanes (safe for f32/bf16/int8 packing) or
    # the full row extent.
    r_blk = max(32, (rows_per_block // 32) * 32)
    b_blk = 1
    if r_total <= r_blk:
        r_blk = r_total
        # Batch-block so each grid step still moves a large tile when the
        # per-batch row count is small (largest divisor of B under the cap).
        cap = max(1, rows_per_block // max(r_total, 1))
        for d in range(min(B, cap), 0, -1):
            if B % d == 0:
                b_blk = d
                break
    num_chunks = pl.cdiv(r_total, r_blk)
    need_mask = (r_total % r_blk) != 0

    kernel = functools.partial(_dice_sums_kernel_3d, r_total=r_total,
                               r_blk=r_blk, need_mask=need_mask)

    in_bytes_per_step = b_blk * r_blk * _LANE * (x3.dtype.itemsize +
                                                 t3.dtype.itemsize)
    vmem_bytes = min(64 << 20, max(32 << 20, 2 * in_bytes_per_step + (2 << 20)))

    cost = pl.CostEstimate(
        flops=4 * B * N,
        transcendentals=0,
        bytes_accessed=B * N * (x3.dtype.itemsize + t3.dtype.itemsize)
        + 2 * B * _LANE * 4,
    )

    inter_lanes, denom_lanes = pl.pallas_call(
        kernel,
        out_shape=(
            jax.ShapeDtypeStruct((B, 1, _LANE), jnp.float32),
            jax.ShapeDtypeStruct((B, 1, _LANE), jnp.float32),
        ),
        grid_spec=pltpu.PrefetchScalarGridSpec(
            num_scalar_prefetch=0,
            grid=(B // b_blk, num_chunks),
            in_specs=[
                pl.BlockSpec((b_blk, r_blk, _LANE), lambda b, k: (b, k, 0)),
                pl.BlockSpec((b_blk, r_blk, _LANE), lambda b, k: (b, k, 0)),
            ],
            out_specs=[
                pl.BlockSpec((b_blk, 1, _LANE), lambda b, k: (b, 0, 0)),
                pl.BlockSpec((b_blk, 1, _LANE), lambda b, k: (b, 0, 0)),
            ],
        ),
        compiler_params=pltpu.CompilerParams(
            dimension_semantics=("parallel", "arbitrary"),
            vmem_limit_bytes=vmem_bytes,
        ),
        cost_estimate=cost,
    )(x3, t3)

    return jnp.sum(inter_lanes, axis=(1, 2)), jnp.sum(denom_lanes, axis=(1, 2))


def _dice_sums_ragged(x, t, cols_per_block):
    """N % 128 != 0: copy-free 2-D (B, N) path, lane tail masked in-kernel."""
    # TODO(synk): with B < 8 this path underuses sublanes; still DMA-bound, and
    # it avoids the full-array pad copy (the dominant cost for ragged N).
    B, N = x.shape
    itembytes = x.dtype.itemsize + t.dtype.itemsize

    if cols_per_block is None:
        # Aim for roughly a 4 MiB combined tile per grid step.
        cols_per_block = ((4 << 20) // max(B * itembytes, 1)) // _LANE * _LANE
    c_blk = max(_LANE, (cols_per_block // _LANE) * _LANE)
    if N <= c_blk:
        c_blk = N                      # full-extent block, no masking needed
    num_chunks = pl.cdiv(N, c_blk)
    need_mask = (N % c_blk) != 0

    kernel = functools.partial(_dice_sums_kernel_2d, n_total=N,
                               c_blk=c_blk, need_mask=need_mask)

    in_bytes_per_step = B * c_blk * itembytes
    vmem_bytes = min(64 << 20, max(32 << 20, 2 * in_bytes_per_step + (2 << 20)))

    cost = pl.CostEstimate(
        flops=4 * B * N,
        transcendentals=0,
        bytes_accessed=B * N * itembytes + 2 * B * 4,
    )

    inter, denom = pl.pallas_call(
        kernel,
        out_shape=(
            jax.ShapeDtypeStruct((B, 1), jnp.float32),
            jax.ShapeDtypeStruct((B, 1), jnp.float32),
        ),
        grid_spec=pltpu.PrefetchScalarGridSpec(
            num_scalar_prefetch=0,
            grid=(num_chunks,),
            in_specs=[
                pl.BlockSpec((B, c_blk), lambda k: (0, k)),
                pl.BlockSpec((B, c_blk), lambda k: (0, k)),
            ],
            out_specs=[
                pl.BlockSpec((B, 1), lambda k: (0, 0)),
                pl.BlockSpec((B, 1), lambda k: (0, 0)),
            ],
        ),
        compiler_params=pltpu.CompilerParams(
            dimension_semantics=("arbitrary",),
            vmem_limit_bytes=vmem_bytes,
        ),
        cost_estimate=cost,
    )(x, t)

    return inter[:, 0], denom[:, 0]


def binary_dice_loss(inp, target, smooth=1.0, rows_per_block=8192,
                     cols_per_block=None):
    """Pallas implementation of BinaryDiceLoss.forward.  Returns a scalar.

    Inputs are streamed in their native dtype (bf16 / int8 / bool / f32); the
    cast to f32 happens inside the kernel, so do NOT pre-cast in the caller.
    """
    B = target.shape[0]
    x = inp.reshape(B, -1)
    t = target.reshape(B, -1)
    N = x.shape[1]

    if N % _LANE == 0:
        inter, denom = _dice_sums_aligned(x, t, rows_per_block)
    else:
        inter, denom = _dice_sums_ragged(x, t, cols_per_block)

    dice = (2.0 * inter + smooth) / (denom + smooth)
    return 1.0 - jnp.mean(dice)


def _reference(inp, target, smooth=1.0):
    B = target.shape[0]
    x = inp.reshape(B, -1).astype(jnp.float32)
    t = target.reshape(B, -1).astype(jnp.float32)
    inter = jnp.sum(x * t, axis=1)
    dice = (2.0 * inter + smooth) / (jnp.sum(x, axis=1) + jnp.sum(t, axis=1) + smooth)
    return 1.0 - jnp.mean(dice)


if __name__ == "__main__":
    key = jax.random.PRNGKey(0)
    k1, k2, k3, k4 = jax.random.split(key, 4)

    # Primary case: flattened size is a multiple of 128 (common path).
    B, C, H, W = 2, 4, 16, 16
    x = jax.nn.sigmoid(jax.random.normal(k1, (B, C, H, W), dtype=jnp.float32))
    target = (jax.random.uniform(k2, (B, C, H, W)) > 0.5).astype(jnp.float32)

    loss_fn = jax.jit(lambda a, b: binary_dice_loss(a, b, smooth=1.0))
    loss = jax.block_until_ready(loss_fn(x, target))
    ref = jax.block_until_ready(_reference(x, target, smooth=1.0))
    assert jnp.allclose(loss, ref, atol=1e-5, rtol=1e-5), (loss, ref)

    # Ragged case (N = 324, not a multiple of 128) with a native bf16 input:
    # exercises the copy-free 2-D path, chunked so the masked tail chunk runs.
    B2, C2, H2, W2 = 2, 4, 9, 9
    xb = jax.nn.sigmoid(jax.random.normal(k3, (B2, C2, H2, W2))).astype(jnp.bfloat16)
    tb = (jax.random.uniform(k4, (B2, C2, H2, W2)) > 0.5).astype(jnp.float32)
    loss2_fn = jax.jit(
        lambda a, b: binary_dice_loss(a, b, smooth=1.0, cols_per_block=128))
    loss2 = jax.block_until_ready(loss2_fn(xb, tb))
    ref2 = jax.block_until_ready(_reference(xb, tb, smooth=1.0))
    assert jnp.allclose(loss2, ref2, atol=1e-4, rtol=1e-4), (loss2, ref2)

    print("KERNEL_OK")
</pallas_src>

<mosaic_0001>
module attributes {stable_mosaic.version = 11 : i64} {
  func.func @_dice_sums_kernel_3d(%arg0: i32, %arg1: i32, %arg2: memref<2x8x128xf32, #tpu.memory_space<vmem>>, %arg3: memref<2x8x128xf32, #tpu.memory_space<vmem>>, %arg4: memref<2x1x128xf32, #tpu.memory_space<vmem>>, %arg5: memref<2x1x128xf32, #tpu.memory_space<vmem>>) attributes {dimension_semantics = [#tpu.dimension_semantics<parallel>, #tpu.dimension_semantics<arbitrary>], iteration_bounds = array<i64: 1, 1>, scalar_prefetch = 0 : i64, scratch_operands = 0 : i64, tpu.core_type = #tpu.core_type<tc>, window_params = [{transform_indices = @transform_0, window_bounds = array<i64: 2, 8, 128>}, {transform_indices = @transform_1, window_bounds = array<i64: 2, 8, 128>}, {transform_indices = @transform_2, window_bounds = array<i64: 2, 1, 128>}, {transform_indices = @transform_3, window_bounds = array<i64: 2, 1, 128>}]} {
    %c0_i32 = arith.constant 0 : i32
    %0 = arith.cmpi eq, %arg1, %c0_i32 : i32
    %1 = arith.extui %0 : i1 to i32
    %c0_i32_0 = arith.constant 0 : i32
    %2 = arith.cmpi ne, %1, %c0_i32_0 : i32
    scf.if %2 {
      %cst_19 = arith.constant 0.000000e+00 : f32
      %17 = vector.broadcast %cst_19 : f32 to vector<2x1x128xf32>
      %c0_20 = arith.constant 0 : index
      %c0_21 = arith.constant 0 : index
      %c0_22 = arith.constant 0 : index
      %18 = vector.load %arg4[%c0_20, %c0_21, %c0_22] : memref<2x1x128xf32, #tpu.memory_space<vmem>>, vector<2x1x128xf32>
      tpu.vector_store %arg4[%c0_20, %c0_21, %c0_22], %17 {strides = array<i32>} : memref<2x1x128xf32, #tpu.memory_space<vmem>>, vector<2x1x128xf32>,
      %cst_23 = arith.constant 0.000000e+00 : f32
      %19 = vector.broadcast %cst_23 : f32 to vector<2x1x128xf32>
      %c0_24 = arith.constant 0 : index
      %c0_25 = arith.constant 0 : index
      %c0_26 = arith.constant 0 : index
      %20 = vector.load %arg5[%c0_24, %c0_25, %c0_26] : memref<2x1x128xf32, #tpu.memory_space<vmem>>, vector<2x1x128xf32>
      tpu.vector_store %arg5[%c0_24, %c0_25, %c0_26], %19 {strides = array<i32>} : memref<2x1x128xf32, #tpu.memory_space<vmem>>, vector<2x1x128xf32>,
    } else {
    }
    %c0 = arith.constant 0 : index
    %c0_1 = arith.constant 0 : index
    %c0_2 = arith.constant 0 : index
    %3 = vector.load %arg2[%c0, %c0_1, %c0_2] : memref<2x8x128xf32, #tpu.memory_space<vmem>>, vector<2x8x128xf32>
    %c0_3 = arith.constant 0 : index
    %c0_4 = arith.constant 0 : index
    %c0_5 = arith.constant 0 : index
    %4 = vector.load %arg3[%c0_3, %c0_4, %c0_5] : memref<2x8x128xf32, #tpu.memory_space<vmem>>, vector<2x8x128xf32>
    %c0_6 = arith.constant 0 : index
    %c0_7 = arith.constant 0 : index
    %c0_8 = arith.constant 0 : index
    %5 = vector.load %arg4[%c0_6, %c0_7, %c0_8] : memref<2x1x128xf32, #tpu.memory_space<vmem>>, vector<2x1x128xf32>
    %6 = arith.mulf %3, %4 : vector<2x8x128xf32>
    %cst = arith.constant dense<0.000000e+00> : vector<2x128xf32>
    %7 = vector.multi_reduction <add>, %6, %cst [1] : vector<2x8x128xf32> to vector<2x128xf32>
    %8 = vector.shape_cast %7 : vector<2x128xf32> to vector<2x1x128xf32>
    %9 = arith.addf %5, %8 : vector<2x1x128xf32>
    %c0_9 = arith.constant 0 : index
    %c0_10 = arith.constant 0 : index
    %c0_11 = arith.constant 0 : index
    %10 = vector.load %arg4[%c0_9, %c0_10, %c0_11] : memref<2x1x128xf32, #tpu.memory_space<vmem>>, vector<2x1x128xf32>
    tpu.vector_store %arg4[%c0_9, %c0_10, %c0_11], %9 {strides = array<i32>} : memref<2x1x128xf32, #tpu.memory_space<vmem>>, vector<2x1x128xf32>,
    %c0_12 = arith.constant 0 : index
    %c0_13 = arith.constant 0 : index
    %c0_14 = arith.constant 0 : index
    %11 = vector.load %arg5[%c0_12, %c0_13, %c0_14] : memref<2x1x128xf32, #tpu.memory_space<vmem>>, vector<2x1x128xf32>
    %12 = arith.addf %3, %4 : vector<2x8x128xf32>
    %cst_15 = arith.constant dense<0.000000e+00> : vector<2x128xf32>
    %13 = vector.multi_reduction <add>, %12, %cst_15 [1] : vector<2x8x128xf32> to vector<2x128xf32>
    %14 = vector.shape_cast %13 : vector<2x128xf32> to vector<2x1x128xf32>
    %15 = arith.addf %11, %14 : vector<2x1x128xf32>
    %c0_16 = arith.constant 0 : index
    %c0_17 = arith.constant 0 : index
    %c0_18 = arith.constant 0 : index
    %16 = vector.load %arg5[%c0_16, %c0_17, %c0_18] : memref<2x1x128xf32, #tpu.memory_space<vmem>>, vector<2x1x128xf32>
    tpu.vector_store %arg5[%c0_16, %c0_17, %c0_18], %15 {strides = array<i32>} : memref<2x1x128xf32, #tpu.memory_space<vmem>>, vector<2x1x128xf32>,
    return
  }
  func.func @transform_0(%arg0: i32, %arg1: i32) -> (i32, i32, i32) {
    %c0_i32 = arith.constant 0 : i32
    %c0_i32_0 = arith.constant 0 : i32
    return %arg0, %arg1, %c0_i32 : i32, i32, i32
  }
  func.func @transform_1(%arg0: i32, %arg1: i32) -> (i32, i32, i32) {
    %c0_i32 = arith.constant 0 : i32
    %c0_i32_0 = arith.constant 0 : i32
    return %arg0, %arg1, %c0_i32 : i32, i32, i32
  }
  func.func @transform_2(%arg0: i32, %arg1: i32) -> (i32, i32, i32) {
    %c0_i32 = arith.constant 0 : i32
    %c0_i32_0 = arith.constant 0 : i32
    %c0_i32_1 = arith.constant 0 : i32
    return %arg0, %c0_i32, %c0_i32_0 : i32, i32, i32
  }
  func.func @transform_3(%arg0: i32, %arg1: i32) -> (i32, i32, i32) {
    %c0_i32 = arith.constant 0 : i32
    %c0_i32_0 = arith.constant 0 : i32
    %c0_i32_1 = arith.constant 0 : i32
    return %arg0, %c0_i32, %c0_i32_0 : i32, i32, i32
  }
}

</mosaic_0001>

<bundles_post_ra>
// kernel: _lambda_.1
= control target key start
LH: loop header
LB: loop body
LE: loop exit
PB: predicated region body
PF: predicated region fallthrough
CT: control target
= control target key end

     0   :  { %v74_v0 = vmov 0.0   ;;  %s143_s2 = inlined_call_operand.vmem [shape: f32[2,1,128], index: 2, kind: output, shape index: {0}]   ;;  %s144_s3 = inlined_call_operand.vmem [shape: f32[2,1,128], index: 3, kind: output, shape index: {1}]   ;;  %s145_s0 = inlined_call_operand.vmem [shape: f32[2,8,128], index: 0, kind: input, shape index: {}]   ;;  %s146_s1 = inlined_call_operand.vmem [shape: f32[2,8,128], index: 1, kind: input, shape index: {}]  }
   0x1   :  { %17 = vst [vmem:[%s143_s2] sm:$0x1] %v74_v0  ;;  %v21_v1 = vld [vmem:[%s145_s0] sm:$0xff]  ;;  %v22_v3 = vld [vmem:[%s145_s0 + $0x8] sm:$0xff] }
   0x2   :  { %v23_v2 = vld [vmem:[%s146_s1] sm:$0xff]  ;;  %18 = vst [vmem:[%s143_s2 + $0x1] sm:$0x1] %v74_v0  ;;  %v24_v5 = vld [vmem:[%s146_s1 + $0x8] sm:$0xff] }
   0x3   :  { %v27_v4 = vmul.f32 %v23_v2, %v21_v1  ;;  %v47_v6 = vadd.f32 %v23_v2, %v21_v1  ;;  %19 = vst [vmem:[%s144_s3] sm:$0x1] %v74_v0  ;;  %v28_v7 = vmul.f32 %v24_v5, %v22_v3  ;;  %v48_v8 = vadd.f32 %v24_v5, %v22_v3 }
   0x4   :  { %20 = vst [vmem:[%s144_s3 + $0x1] sm:$0x1] %v74_v0 }
   0x5   :  { %v29_v9 = vrot.slane %v27_v4, 4  ;;  %v49_v10 = vrot.slane %v47_v6, 4  ;;  %v35_v11 = vrot.slane %v28_v7, 4  ;;  %v55_v12 = vrot.slane %v48_v8, 4 }
   0x7   :  { %v30_v13 = vadd.f32 %v29_v9, %v27_v4  ;;  %v50_v14 = vadd.f32 %v49_v10, %v47_v6  ;;  %v36_v15 = vadd.f32 %v35_v11, %v28_v7  ;;  %v56_v16 = vadd.f32 %v55_v12, %v48_v8 }
   0x8   :  { %v25_v27 = vld [vmem:[%s143_s2] sm:$0x1] }
   0x9   :  { %v31_v17 = vrot.slane %v30_v13, 2  ;;  %v51_v18 = vrot.slane %v50_v14, 2  ;;  %v37_v19 = vrot.slane %v36_v15, 2  ;;  %v57_v20 = vrot.slane %v56_v16, 2  ;;  %v26_v32 = vld [vmem:[%s143_s2 + $0x1] sm:$0x1] }
   0xa   :  { %v45_v29 = vld [vmem:[%s144_s3] sm:$0x1] }
   0xb   :  { %v32_v21 = vadd.f32 %v31_v17, %v30_v13  ;;  %v52_v22 = vadd.f32 %v51_v18, %v50_v14  ;;  %v38_v23 = vadd.f32 %v37_v19, %v36_v15  ;;  %v58_v24 = vadd.f32 %v57_v20, %v56_v16  ;;  %v46_v34 = vld [vmem:[%s144_s3 + $0x1] sm:$0x1] }
   0xd   :  { %v33_v25 = vrot.slane %v32_v21, 1  ;;  %v53_v26 = vrot.slane %v52_v22, 1  ;;  %v39_v28 = vrot.slane %v38_v23, 1  ;;  %v59_v30 = vrot.slane %v58_v24, 1 }
   0xf   :  { %v34_v31 = vadd.f32 %v33_v25, %v32_v21  ;;  %v54_v33 = vadd.f32 %v53_v26, %v52_v22  ;;  %v40_v35 = vadd.f32 %v39_v28, %v38_v23  ;;  %v60_v36 = vadd.f32 %v59_v30, %v58_v24 }
  0x11   :  { %v41_v37 = vadd.f32 %v34_v31, %v25_v27  ;;  %v61_v38 = vadd.f32 %v54_v33, %v45_v29  ;;  %v42_v39 = vadd.f32 %v40_v35, %v26_v32  ;;  %v62_v40 = vadd.f32 %v60_v36, %v46_v34 }
  0x13   :  { %43 = vst [vmem:[%s143_s2] sm:$0x1] %v41_v37 }
  0x14   :  { %44 = vst [vmem:[%s143_s2 + $0x1] sm:$0x1] %v42_v39 }
  0x15   :  { %63 = vst [vmem:[%s144_s3] sm:$0x1] %v61_v38 }
  0x16   :  { %64 = vst [vmem:[%s144_s3 + $0x1] sm:$0x1] %v62_v40 }

</bundles_post_ra>
